<compile_context>
chip_gen: v5e
topology: v5e:2x2
jax: 0.10.0
libtpu: 0.0.40
codegen_flags: <defaults>
</compile_context>

<pallas_src>
import jax
import jax.numpy as jnp
from jax.experimental import pallas as pl
from jax.experimental.pallas import tpu as pltpu

N_COPIES = 10  # torch.cat([v2]*4 + [v1]*6, 0) with v1 == v2


def _mm_cat_kernel(x1_ref, x2_ref, out_ref):
    # Single MXU matmul; result (M, N) lives in vregs.
    v = jnp.dot(x1_ref[...], x2_ref[...], preferred_element_type=jnp.float32)
    v = v.astype(out_ref.dtype)
    # Fan out to all 10 row-blocks in one lane-dense store; Pallas emits one
    # (N_COPIES*M, N) writeback DMA for the whole output.
    out_ref[...] = jnp.tile(v, (N_COPIES, 1))


def mm_cat(x1, x2):
    M, K = x1.shape
    K2, N = x2.shape
    assert K == K2, "inner dims must match for mm"
    out_dtype = jnp.promote_types(x1.dtype, x2.dtype)
    itemsize = jnp.dtype(out_dtype).itemsize

    return pl.pallas_call(
        _mm_cat_kernel,
        out_shape=jax.ShapeDtypeStruct((N_COPIES * M, N), out_dtype),
        # No grid: whole (small) problem in one invocation.  Blocks equal the
        # full array dims, so the (8,128) divisibility rule is satisfied.
        in_specs=[
            pl.BlockSpec((M, K), lambda: (0, 0)),
            pl.BlockSpec((K, N), lambda: (0, 0)),
        ],
        out_specs=pl.BlockSpec((N_COPIES * M, N), lambda: (0, 0)),
        cost_estimate=pl.CostEstimate(
            flops=2 * M * K * N,
            transcendentals=0,
            bytes_accessed=(M * K + K * N + N_COPIES * M * N) * itemsize,
        ),
    )(x1, x2)


if __name__ == "__main__":
    # Small shapes consistent with mm(x1, x2): x1 (M, K), x2 (K, N).
    M, K, N = 8, 32, 128
    key = jax.random.PRNGKey(0)
    k1, k2 = jax.random.split(key)
    x1 = jax.random.normal(k1, (M, K), dtype=jnp.float32)
    x2 = jax.random.normal(k2, (K, N), dtype=jnp.float32)

    out = mm_cat(x1, x2)
    out = jax.block_until_ready(out)

    # Reference check in plain JAX (v1 == v2 == x1 @ x2).
    v = x1 @ x2
    ref = jnp.concatenate([v] * 4 + [v] * 6, axis=0)
    assert out.shape == (N_COPIES * M, N)
    assert jnp.allclose(out, ref, atol=1e-5, rtol=1e-5)

    print("KERNEL_OK")
</pallas_src>

<mosaic_0001>
module attributes {stable_mosaic.version = 11 : i64} {
  func.func @_mm_cat_kernel(%arg0: memref<8x32xf32, #tpu.memory_space<vmem>>, %arg1: memref<32x128xf32, #tpu.memory_space<vmem>>, %arg2: memref<80x128xf32, #tpu.memory_space<vmem>>) attributes {dimension_semantics = [], scalar_prefetch = 0 : i64, scratch_operands = 0 : i64, tpu.core_type = #tpu.core_type<tc>} {
    %c0 = arith.constant 0 : index
    %c0_0 = arith.constant 0 : index
    %0 = vector.load %arg0[%c0, %c0_0] : memref<8x32xf32, #tpu.memory_space<vmem>>, vector<8x32xf32>
    %c0_1 = arith.constant 0 : index
    %c0_2 = arith.constant 0 : index
    %1 = vector.load %arg1[%c0_1, %c0_2] : memref<32x128xf32, #tpu.memory_space<vmem>>, vector<32x128xf32>
    %cst = arith.constant dense<0.000000e+00> : vector<8x128xf32>
    %2 = tpu.matmul %0, %1, %cst {dimension_numbers = #tpu.dot_dimension_numbers<[1], [0], [0], [1], [0, 0, 1, 1], [], []>} : vector<8x32xf32>, vector<32x128xf32>, vector<8x128xf32> -> vector<8x128xf32>
    %3 = tpu.concatenate %2, %2, %2, %2, %2, %2, %2, %2, %2, %2 in 0 : vector<8x128xf32>, vector<8x128xf32>, vector<8x128xf32>, vector<8x128xf32>, vector<8x128xf32>, vector<8x128xf32>, vector<8x128xf32>, vector<8x128xf32>, vector<8x128xf32>, vector<8x128xf32> -> vector<80x128xf32>
    %c0_3 = arith.constant 0 : index
    %c0_4 = arith.constant 0 : index
    %4 = vector.load %arg2[%c0_3, %c0_4] : memref<80x128xf32, #tpu.memory_space<vmem>>, vector<80x128xf32>
    tpu.vector_store %arg2[%c0_3, %c0_4], %3 {strides = array<i32>} : memref<80x128xf32, #tpu.memory_space<vmem>>, vector<80x128xf32>,
    return
  }
}

</mosaic_0001>

<bundles_post_ra>
// kernel: tpu_custom_call.1
= control target key start
LH: loop header
LB: loop body
LE: loop exit
PB: predicated region body
PF: predicated region fallthrough
CT: control target
= control target key end

     0   :  { %7 = vsyncpa [#allocation3], 0  ;;  %s220_s0 = inlined_call_operand.hbm [shape: f32[8,32], index: 0, kind: input, shape index: {}]   ;;  %s221_s1 = inlined_call_operand.hbm [shape: f32[32,128], index: 1, kind: input, shape index: {}]   ;;  %s222_s2 = inlined_call_operand.hbm [shape: f32[80,128], index: 2, kind: output, shape index: {}]  }
   0x1   :  { %8 = vsyncpa [#allocation6], 0 }
   0x2   :  { %9 = vsyncpa [#allocation4], 0  ;;  %s15_s11 = sshll.u32 %s220_s0, 4  ;;  %s185_s12 = smov [#allocation2]   ;;  %s16_s11 = int_to_ptr.hbm [resolvable:$true] %s15_s11 }
   0x3   :  { %s17_s13 = sshll.u32 %s185_s12, 4  ;;  %s25_s16 = sshll.u32 %s221_s1, 4  ;;  %s18_s13 = int_to_ptr.vmem [resolvable:$true] %s17_s13  ;;  %s26_s16 = int_to_ptr.hbm [resolvable:$true] %s25_s16 }
   0x4   :  { %20 = dma.hbm_to_vmem [thread:$0]  %s16_s11, 128, %s18_s13, [#allocation3]  }
   0x5   :  { %s186_s17 = smov [#allocation5]   ;;  %s187_s19 = smov 128  }
   0x6   :  { %s27_s18 = sshll.u32 %s186_s17, 4  ;;  %s188_s20 = smov 8   ;;  %s28_s18 = int_to_ptr.vmem [resolvable:$true] %s27_s18 }
   0x7   :  { %33 = dma.hbm_to_vmem [thread:$0]  %s26_s16, 512, %s28_s18, [#allocation6], %s187_s19, %s187_s19, %s188_s20  }
   0x8   :  { %179 = dma.done.wait [#allocation3], 128  }
   0x9   :  { %180 = vsyncadd [#allocation3], 4294967168 }
   0xa   :  { %181 = dma.done.wait [#allocation6], 512  }
   0xb   :  { %182 = vsyncadd [#allocation6], 4294966784  ;;  %v46_v0 = vld [vmem:[#allocation5 + $0x18] sm:$0xff]  ;;  %v45_v1 = vld [vmem:[#allocation5 + $0x10] sm:$0xff]  ;;  %vm47_vm0 = vcmask 261120   ;;  %s189_s0 = smov [#allocation7]  }
   0xc   :  { %63 = vmatpush.msra.mxu0 %v46_v0  ;;  %v44_v2 = vld [vmem:[#allocation5 + $0x8] sm:$0xff]  ;;  %v43_v3 = vld [vmem:[#allocation5] sm:$0xff]  ;;  %v42_v4 = vld [vmem:[#allocation2] sm:$0xff]  ;;  %s85_s1 = sshll.u32 %s189_s0, 4  ;;  %s87_s23 = sshll.u32 %s222_s2, 4  ;;  %s86_s1 = int_to_ptr.vmem [resolvable:$true] %s85_s1  ;;  %s88_s23 = int_to_ptr.hbm [resolvable:$true] %s87_s23 }
   0xe   :  { %64 = vmatpush.msra.mxu0 %v45_v1 }
  0x10   :  { %65 = vmatpush.msra.mxu0 %v44_v2 }
  0x12   :  { %66 = vmatpush.msra.mxu0 %v43_v3 }
  0x13   :  { %101 = vmatmul.msk.f32.vlgmr.msra.gmra.mxu0 %vm47_vm0, %v42_v4 }
  0x90   :  { %v68_v5 = vpop.f32.mrf.mxu0 }
  0x91   :  { %71 = vst [vmem:[#allocation7] sm:$0xff] %v68_v5 }
  0x92   :  { %72 = vst [vmem:[#allocation7 + $0x8] sm:$0xff] %v68_v5 }
  0x93   :  { %73 = vst [vmem:[#allocation7 + $0x10] sm:$0xff] %v68_v5 }
  0x94   :  { %74 = vst [vmem:[#allocation7 + $0x18] sm:$0xff] %v68_v5 }
  0x95   :  { %75 = vst [vmem:[#allocation7 + $0x20] sm:$0xff] %v68_v5 }
  0x96   :  { %76 = vst [vmem:[#allocation7 + $0x28] sm:$0xff] %v68_v5 }
  0x97   :  { %77 = vst [vmem:[#allocation7 + $0x30] sm:$0xff] %v68_v5 }
  0x98   :  { %78 = vst [vmem:[#allocation7 + $0x38] sm:$0xff] %v68_v5 }
  0x99   :  { %79 = vst [vmem:[#allocation7 + $0x40] sm:$0xff] %v68_v5 }
  0x9a   :  { %80 = vst [vmem:[#allocation7 + $0x48] sm:$0xff] %v68_v5 }
  0x9b   :  { %93 = dma.vmem_to_hbm [thread:$0]  %s86_s1, 1280, %s88_s23, [#allocation4], %s187_s19, %s187_s19, %s188_s20  }
  0x9c   :  { %183 = dma.done.wait [#allocation4], 1280  }
  0x9d   :  { %184 = vsyncadd [#allocation4], 4294966016 }
  0x9e   :  { %98 = vsyncpa [#allocation3], 1 }
  0x9f   :  { %99 = vsyncpa [#allocation6], 1 }
  0xa0   :  { %100 = vsyncpa [#allocation4], 1 }

</bundles_post_ra>
